<compile_context>
chip_gen: v7x
topology: tpu7x:2x2x1
jax: 0.10.0
libtpu: 0.0.40
codegen_flags: <defaults>
</compile_context>

<pallas_src>
import functools

import jax
import jax.numpy as jnp
from jax import lax
from jax.experimental import pallas as pl
from jax.experimental.pallas import tpu as pltpu


def _static_int_pow(x, n):
    """x**n for a static positive int n via binary exponentiation (VALU only)."""
    acc = None
    base = x
    while True:
        if n & 1:
            acc = base if acc is None else acc * base
        n >>= 1
        if n == 0:
            break
        base = base * base
    return acc


def gem_kernel(p_ref, x_ref, o_ref, acc_ref, *, eps, inv_hw, hw, thw,
               static_p, needs_mask):
    # p_ref: (1,) f32 SMEM.  x_ref: (TBC, THW).  o_ref: (TBC, 1).
    # acc_ref: (TBC, 1) f32 VMEM scratch, persists across the spatial axis.
    s = pl.program_id(1)

    @pl.when(s == 0)
    def _init():
        acc_ref[...] = jnp.zeros_like(acc_ref)

    x = x_ref[...].astype(jnp.float32)
    x = jnp.maximum(x, jnp.float32(eps))            # clamp(min=eps)

    if static_p is not None:
        # Fast path: integer p -> repeated VALU multiplies (no EUP pressure).
        xp = _static_int_pow(x, static_p)
    else:
        # x ** p == exp(p * log(x)); x > 0 after the clamp so log is safe.
        xp = jnp.exp(p_ref[0] * jnp.log(x))

    if needs_mask:
        # Last spatial block overhangs H*W: zero the out-of-range columns so
        # garbage reads never reach the accumulator.
        col = lax.broadcasted_iota(jnp.int32, xp.shape, dimension=1)
        xp = jnp.where(col + s * thw < hw, xp, jnp.float32(0.0))

    acc_ref[...] += jnp.sum(xp, axis=-1, keepdims=True)

    @pl.when(s == pl.num_programs(1) - 1)
    def _finalize():
        # Mean via compile-time 1/(H*W) multiply (no vector divide).
        mean = acc_ref[...] * jnp.float32(inv_hw)
        if static_p is not None:
            inv_p = jnp.float32(1.0 / static_p)
        else:
            inv_p = 1.0 / p_ref[0]
        # mean > 0 after the eps clamp for typical p; if eps**p underflows to
        # 0, exp(log(0) * inv_p) = exp(-inf) = 0, matching pow(0, 1/p).
        o_ref[...] = jnp.exp(jnp.log(mean) * inv_p).astype(o_ref.dtype)


def _choose_tiles(N, HW, itemsize, budget_bytes):
    """Pick (TBC, THW, grid_n, grid_s, needs_mask).

    Blocks are (8,128)-legal, sized to a VMEM working-set budget that accounts
    for double-buffered input + f32 temporaries and lane padding, and the row
    tile is capped so the parallel axis keeps several steps (v7x dual-TC).
    """
    def pad128(v):
        return ((v + 127) // 128) * 128

    bpe = 2 * itemsize + 8           # 2x double-buffered input + ~2 f32 temps
    min_rows = min(N, 8)

    # --- spatial tile -------------------------------------------------------
    if min_rows * pad128(HW) * bpe <= budget_bytes:
        thw, needs_mask = HW, False                 # single spatial block
    else:
        max_thw = max(128, (budget_bytes // (min_rows * bpe)) // 128 * 128)
        max_thw = min(max_thw, max(128, (HW // 128) * 128))
        thw = None
        d = max_thw
        while d >= 128:                             # prefer an exact divisor
            if HW % d == 0:
                thw = d
                break
            d -= 128
        if thw is None:
            thw = max_thw                           # masked tail block
        needs_mask = (HW % thw) != 0
    grid_s = (HW + thw - 1) // thw

    # --- row (B*C) tile -----------------------------------------------------
    if N <= 8:
        tbc = N                                     # full-dim block is legal
    else:
        rows_budget = budget_bytes // (pad128(thw) * bpe)
        rows_budget = max(8, (rows_budget // 8) * 8)
        # Aim for >= ~8 grid steps so both v7x TensorCores get work.
        target_rows = max(8, ((-(-N // 8) + 7) // 8) * 8)
        tbc = min(rows_budget, target_rows)
    grid_n = (N + tbc - 1) // tbc

    return tbc, thw, grid_n, grid_s, needs_mask


def gem_pool(x, p, eps=1e-6):
    """x: (B, C, H, W); p: static Python scalar or (1,) array. -> (B, C, 1, 1)."""
    B, C, H, W = x.shape
    N, HW = B * C, H * W
    # Free metadata reshape: collapse (B, C) onto sublanes, H*W onto lanes.
    x2 = x.reshape(N, HW)

    static_p = None
    if isinstance(p, (int, float)) and float(p) == int(p) and 1 <= int(p) <= 16:
        static_p = int(p)
    p_arr = jnp.asarray(p, jnp.float32).reshape(1)

    # Per-generation VMEM budget (128 MiB v5e/v6e, 64 MiB v7x).
    try:
        total_vmem = int(pltpu.get_tpu_info().vmem_capacity_bytes)
    except Exception:
        total_vmem = 64 * 1024 * 1024
    working_budget = int(total_vmem * 0.4)
    vmem_limit = min(int(total_vmem * 3 // 4), 100 * 1024 * 1024)

    itemsize = jnp.dtype(x.dtype).itemsize
    tbc, thw, grid_n, grid_s, needs_mask = _choose_tiles(
        N, HW, itemsize, working_budget)

    kernel = functools.partial(
        gem_kernel,
        eps=float(eps),
        inv_hw=1.0 / float(HW),
        hw=HW,
        thw=thw,
        static_p=static_p,
        needs_mask=needs_mask,
    )

    out = pl.pallas_call(
        kernel,
        out_shape=jax.ShapeDtypeStruct((N, 1), x.dtype),
        grid=(grid_n, grid_s),
        in_specs=[
            pl.BlockSpec(memory_space=pltpu.MemorySpace.SMEM),      # p (scalar)
            pl.BlockSpec((tbc, thw), lambda i, s: (i, s)),          # x rows
        ],
        out_specs=pl.BlockSpec((tbc, 1), lambda i, s: (i, 0)),
        scratch_shapes=[pltpu.VMEM((tbc, 1), jnp.float32)],         # f32 acc
        compiler_params=pltpu.CompilerParams(
            dimension_semantics=("parallel", "arbitrary"),
            vmem_limit_bytes=vmem_limit,
        ),
    )(p_arr, x2)

    return out.reshape(B, C, 1, 1)


if __name__ == "__main__":
    # Small shapes consistent with the module's NCHW forward.
    batch, channels, height, width = 2, 4, 16, 16
    p_init = 3.0
    eps = 1e-6

    key = jax.random.PRNGKey(0)
    x = jax.random.normal(key, (batch, channels, height, width), dtype=jnp.float32)
    p = jnp.ones((1,), dtype=jnp.float32) * p_init   # trainable p, as in GeM

    # Pure-JAX reference mirroring the PyTorch forward.
    def ref_gem(x, p, eps=1e-6):
        xp = jnp.power(jnp.maximum(x, eps), p)
        pooled = jnp.mean(xp, axis=(-2, -1), keepdims=True)
        return jnp.power(pooled, 1.0 / p)

    expected = ref_gem(x, p_init, eps)

    # Traced-p path (trainable Parameter, exp/log in-kernel).
    out_traced = jax.block_until_ready(gem_pool(x, p, eps=eps))
    assert out_traced.shape == (batch, channels, 1, 1)
    assert jnp.allclose(out_traced, expected, atol=1e-5, rtol=1e-4)

    # Static integer-p fast path (x*x*x on the VALU).
    out_static = jax.block_until_ready(gem_pool(x, 3, eps=eps))
    assert out_static.shape == (batch, channels, 1, 1)
    assert jnp.allclose(out_static, expected, atol=1e-5, rtol=1e-4)

    print("KERNEL_OK")
</pallas_src>

<mosaic_0001>
module attributes {stable_mosaic.version = 11 : i64} {
  func.func @gem_kernel(%arg0: i32, %arg1: i32, %arg2: memref<1xf32, #tpu.memory_space<smem>>, %arg3: memref<8x256xf32, #tpu.memory_space<vmem>>, %arg4: memref<8x1xf32, #tpu.memory_space<vmem>>, %arg5: memref<8x1xf32, #tpu.memory_space<vmem>>) attributes {dimension_semantics = [#tpu.dimension_semantics<parallel>, #tpu.dimension_semantics<arbitrary>], iteration_bounds = array<i64: 1, 1>, scalar_prefetch = 0 : i64, scratch_operands = 1 : i64, tpu.core_type = #tpu.core_type<tc>, window_params = [{transform_indices = @transform_0, window_bounds = array<i64: 1>}, {transform_indices = @transform_1, window_bounds = array<i64: 8, 256>}, {transform_indices = @transform_2, window_bounds = array<i64: 8, 1>}]} {
    %c0_i32 = arith.constant 0 : i32
    %0 = arith.cmpi eq, %arg1, %c0_i32 : i32
    %1 = arith.extui %0 : i1 to i32
    %c0_i32_0 = arith.constant 0 : i32
    %2 = arith.cmpi ne, %1, %c0_i32_0 : i32
    scf.if %2 {
      %cst_10 = arith.constant 0.000000e+00 : f32
      %19 = vector.broadcast %cst_10 : f32 to vector<8x1xf32>
      %c0_11 = arith.constant 0 : index
      %c0_12 = arith.constant 0 : index
      %20 = vector.load %arg5[%c0_11, %c0_12] : memref<8x1xf32, #tpu.memory_space<vmem>>, vector<8x1xf32>
      tpu.vector_store %arg5[%c0_11, %c0_12], %19 {strides = array<i32>} : memref<8x1xf32, #tpu.memory_space<vmem>>, vector<8x1xf32>,
    } else {
    }
    %c0 = arith.constant 0 : index
    %c0_1 = arith.constant 0 : index
    %3 = vector.load %arg3[%c0, %c0_1] : memref<8x256xf32, #tpu.memory_space<vmem>>, vector<8x256xf32>
    %cst = arith.constant 9.99999997E-7 : f32
    %4 = vector.broadcast %cst : f32 to vector<8x256xf32>
    %5 = arith.maximumf %3, %4 : vector<8x256xf32>
    %c0_2 = arith.constant 0 : index
    %6 = memref.load %arg2[%c0_2] : memref<1xf32, #tpu.memory_space<smem>>
    %7 = math.log %5 : vector<8x256xf32>
    %8 = vector.broadcast %6 : f32 to vector<8x256xf32>
    %9 = arith.mulf %8, %7 : vector<8x256xf32>
    %10 = math.exp %9 : vector<8x256xf32>
    %c0_3 = arith.constant 0 : index
    %c0_4 = arith.constant 0 : index
    %11 = vector.load %arg5[%c0_3, %c0_4] : memref<8x1xf32, #tpu.memory_space<vmem>>, vector<8x1xf32>
    %cst_5 = arith.constant dense<0.000000e+00> : vector<8xf32>
    %12 = vector.multi_reduction <add>, %10, %cst_5 [1] : vector<8x256xf32> to vector<8xf32>
    %13 = vector.shape_cast %12 : vector<8xf32> to vector<8x1xf32>
    %14 = arith.addf %11, %13 : vector<8x1xf32>
    %c0_6 = arith.constant 0 : index
    %c0_7 = arith.constant 0 : index
    %15 = vector.load %arg5[%c0_6, %c0_7] : memref<8x1xf32, #tpu.memory_space<vmem>>, vector<8x1xf32>
    tpu.vector_store %arg5[%c0_6, %c0_7], %14 {strides = array<i32>} : memref<8x1xf32, #tpu.memory_space<vmem>>, vector<8x1xf32>,
    %c0_i32_8 = arith.constant 0 : i32
    %16 = arith.cmpi eq, %arg1, %c0_i32_8 : i32
    %17 = arith.extui %16 : i1 to i32
    %c0_i32_9 = arith.constant 0 : i32
    %18 = arith.cmpi ne, %17, %c0_i32_9 : i32
    scf.if %18 {
      %c0_10 = arith.constant 0 : index
      %c0_11 = arith.constant 0 : index
      %19 = vector.load %arg5[%c0_10, %c0_11] : memref<8x1xf32, #tpu.memory_space<vmem>>, vector<8x1xf32>
      %cst_12 = arith.constant 3.906250e-03 : f32
      %20 = vector.broadcast %cst_12 : f32 to vector<8x1xf32>
      %21 = arith.mulf %19, %20 : vector<8x1xf32>
      %c0_13 = arith.constant 0 : index
      %22 = memref.load %arg2[%c0_13] : memref<1xf32, #tpu.memory_space<smem>>
      %cst_14 = arith.constant 1.000000e+00 : f32
      %23 = arith.divf %cst_14, %22 : f32
      %24 = math.log %21 : vector<8x1xf32>
      %25 = vector.broadcast %23 : f32 to vector<8x1xf32>
      %26 = arith.mulf %24, %25 : vector<8x1xf32>
      %27 = math.exp %26 : vector<8x1xf32>
      %c0_15 = arith.constant 0 : index
      %c0_16 = arith.constant 0 : index
      %28 = vector.load %arg4[%c0_15, %c0_16] : memref<8x1xf32, #tpu.memory_space<vmem>>, vector<8x1xf32>
      tpu.vector_store %arg4[%c0_15, %c0_16], %27 {strides = array<i32>} : memref<8x1xf32, #tpu.memory_space<vmem>>, vector<8x1xf32>,
    } else {
    }
    return
  }
  func.func @transform_0(%arg0: i32, %arg1: i32) -> i32 {
    %c0_i32 = arith.constant 0 : i32
    %c0_i32_0 = arith.constant 0 : i32
    return %c0_i32 : i32
  }
  func.func @transform_1(%arg0: i32, %arg1: i32) -> (i32, i32) {
    %c0_i32 = arith.constant 0 : i32
    return %arg0, %arg1 : i32, i32
  }
  func.func @transform_2(%arg0: i32, %arg1: i32) -> (i32, i32) {
    %c0_i32 = arith.constant 0 : i32
    %c0_i32_0 = arith.constant 0 : i32
    return %arg0, %c0_i32 : i32, i32
  }
}

</mosaic_0001>

<bundles_post_ra>
// kernel: tpu_custom_call.1
= control target key start
LH: loop header
LB: loop body
LE: loop exit
PB: predicated region body
PF: predicated region fallthrough
CT: control target
= control target key end

     0   :  { %8 = vsyncpa [#allocation5], 0  ;;  %s116_s9 = smov [#allocation4]   ;;  %s154_s0 = inlined_call_operand.<no memory space> [shape: f32[1], index: 0, kind: input, shape index: {}]   ;;  %s155_s1 = inlined_call_operand.hbm [shape: f32[8,256], index: 1, kind: input, shape index: {}]   ;;  %s156_s2 = inlined_call_operand.vmem [shape: f32[8,1], index: 2, kind: output, shape index: {}]  }
   0x1   :  { %s17_s10 = sshll.u32 %s116_s9, 4  ;;  %s92_s13 = scalar_lea.hbm %s155_s1, 256  ;;  %s18_s10 = int_to_ptr.vmem [resolvable:$true] %s17_s10 }
   0x2   :  { %p93_p0 = scmp.ne.s32.totalorder %s155_s1, %s92_s13  ;;  %p96_p1 = scmp.lt.u32.totalorder %s92_s13, %s155_s1 }
   0x4   :  { %p98_p2 = pnand %p96_p1, %p93_p0 }
   0x6   :  { %101 = shalt.err (!%p98_p2)
}
   0x7   :  { %s102_s18 = scalar_lea.vmem %s18_s10, 256  ;;  %p107_p4 = scmp.lt.s32.totalorder %s18_s10, %s18_s10 }
   0x8   :  { %p103_p3 = scmp.ne.s32.totalorder %s18_s10, %s102_s18  ;;  %p108_p5 = scmp.lt.s32.totalorder %s102_s18, %s102_s18 }
   0xa   :  { %p109_p6 = por %p108_p5, %p107_p4 }
   0xc   :  { %p110_p7 = pnand %p109_p6, %p103_p3 }
   0xe   :  { %113 = shalt.err (!%p110_p7)
}
   0xf   :  { %20 = dma.hbm_to_vmem [thread:$0]  %s155_s1, 256, %s18_s10, [#allocation5]  }
  0x10   :  { %114 = dma.done.wait [#allocation5], 256  }
  0x11   :  { %115 = vsyncadd [#allocation5], 4294967040  ;;  %vm28_vm0 = vcmask 7168   ;;  %v39_v0 = vstv %s154_s0  ;;  %v117_v1 = vmov 0.0   ;;  %v30_v2 = vld [vmem:[#allocation4] sm:$0xff]  ;;  %v31_v3 = vld [vmem:[#allocation4 + $0x8] sm:$0xff] }
  0x12   :  { %29 = vst.msk [vmem:[#allocation2] sm:$0xff] %vm28_vm0, %v117_v1  ;;  %78 = vrcp.f32 %v39_v0  ;;  %v32_v4 = vmax.f32 %v30_v2, 1e-06  ;;  %v33_v5 = vmax.f32 %v31_v3, 1e-06 }
  0x14   :  { %80 = vlog2.f32 %v32_v4 }
  0x15   :  { %82 = vlog2.f32 %v33_v5 }
  0x19   :  { %v46_v18 = vld [vmem:[#allocation2] sm:$0xff] }
  0x1c   :  { %v79_v6 = vpop.eup %78 }
  0x1d   :  { %74 = vpush %v79_v6 }
  0x1e   :  { %v81_v7 = vpop.eup %80 }
  0x1f   :  { %v83_v8 = vpop.eup %82  ;;  %v36_v9 = vmul.f32 0.6931472, %v81_v7 }
  0x20   :  { %v38_v10 = vmul.f32 0.6931472, %v83_v8 }
  0x21   :  { %v40_v11 = vmul.f32 %v39_v0, %v36_v9 }
  0x22   :  { %v41_v12 = vmul.f32 %v39_v0, %v38_v10 }
  0x23   :  { %v42_v13 = vmul.f32 1.442695, %v40_v11 }
  0x24   :  { %v44_v14 = vmul.f32 1.442695, %v41_v12 }
  0x25   :  { %84 = vpow2.f32 %v42_v13 }
  0x26   :  { %86 = vpow2.f32 %v44_v14 }
  0x2f   :  { %v85_v15 = vpop.eup %84 }
  0x30   :  { %v87_v16 = vpop.eup %86 }
  0x31   :  { %v47_v17 = vadd.f32 %v87_v16, %v85_v15 }
  0x33   :  { %48 = vadd.xlane.f32.xlu0 %v47_v17 }
  0x4e   :  { %s75_s0 = spop %74 }
  0x4f   :  { %v64_v24 = vstv %s75_s0 }
  0xc0   :  { %v49_v19 = vpop.xlane.xlu0 %48 }
  0xc1   :  { %v50_v20 = vadd.f32 %v49_v19, %v46_v18 }
  0xc3   :  { %52 = vst.msk [vmem:[#allocation2] sm:$0xff] %vm28_vm0, %v50_v20 }
  0xca   :  { %v56_v21 = vld [vmem:[#allocation2] sm:$0xff] }
  0xcb   :  { %v57_v22 = vmul.f32 0.00390625, %v56_v21 }
  0xcd   :  { %88 = vlog2.f32 %v57_v22 }
  0xd7   :  { %v89_v23 = vpop.eup %88 }
  0xd8   :  { %v63_v25 = vmul.f32 0.6931472, %v89_v23 }
  0xda   :  { %v65_v26 = vmul.f32 %v64_v24, %v63_v25 }
  0xdc   :  { %v66_v27 = vmul.f32 1.442695, %v65_v26 }
  0xde   :  { %90 = vpow2.f32 %v66_v27 }
  0xe8   :  { %v91_v28 = vpop.eup %90 }
  0xe9   :  { %68 = vst.msk [vmem:[%s156_s2] sm:$0xff] %vm28_vm0, %v91_v28 }
  0xea   :  { %73 = vsyncpa [#allocation5], 1 }

</bundles_post_ra>
